<compile_context>
chip_gen: v7x
topology: tpu7x:2x2x1
jax: 0.10.0
libtpu: 0.0.40
codegen_flags: <defaults>
</compile_context>

<pallas_src>
import functools
import math

import jax
import jax.numpy as jnp
from jax.experimental import pallas as pl
from jax.experimental.pallas import tpu as pltpu

_LANES = 128


def _round_up(x, m):
    return ((x + m - 1) // m) * m


def _lcm(a, b):
    return a * b // math.gcd(a, b)


def _loss_kernel(pred_ref, target_ref, out_ref, *,
                 num_params: int, w_intr: float, w_dist: float,
                 base_coef: int):
    """One grid step: weighted sum of squared diffs over a (tb, 128) tile."""
    pid = pl.program_id(0)

    @pl.when(pid == 0)
    def _init():
        out_ref[0] = jnp.float32(0.0)

    diff = pred_ref[...].astype(jnp.float32) - target_ref[...].astype(jnp.float32)
    d2 = diff * diff

    tb, lanes = d2.shape
    row = jax.lax.broadcasted_iota(jnp.int32, (tb, lanes), 0)
    lane = jax.lax.broadcasted_iota(jnp.int32, (tb, lanes), 1)
    # Parameter-column index of each flattened element.  The in-block part is
    # grid-invariant; when tb*128 is a multiple of num_params (base_coef == 0)
    # no per-step correction is needed at all.
    col = (row * lanes + lane) % num_params
    if base_coef != 0:  # trace-time branch; general (non-aligned) fallback
        shift = (pid * base_coef) % num_params           # scalar-unit math
        colx = col + shift
        col = jnp.where(colx >= num_params, colx - num_params, colx)

    w = jnp.where(col < 4, jnp.float32(w_intr), jnp.float32(w_dist))
    out_ref[0] += jnp.sum(d2 * w)


def camera_calibration_loss(pred, target, *, image_size=(224, 224),
                            lambda_intrinsics=1.0, lambda_distortion=1.0,
                            block_rows=1024):
    """Pallas TPU implementation of CameraCalibrationLoss.forward.

    pred, target: (batch, num_params) with num_params > 4.
    Returns a float32 scalar.
    """
    assert pred.shape == target.shape
    assert pred.ndim == 2 and pred.shape[1] > 4
    del image_size  # unused by the forward pass, kept for signature parity

    batch, num_params = pred.shape
    n_elem = batch * num_params

    # Fold the 1/N of each mean and the lambdas into per-element weights.
    w_intr = float(lambda_intrinsics) / float(batch * 4)
    w_dist = float(lambda_distortion) / float(batch * (num_params - 4))

    # --- block sizing -------------------------------------------------------
    n_rows = pl.cdiv(n_elem, _LANES)
    want = max(8, min(int(block_rows), _round_up(n_rows, 8)))
    want = _round_up(want, 8)
    # Rows needed so tb*128 % num_params == 0 (grid-invariant weight tile).
    align = _lcm(8, num_params // math.gcd(num_params, _LANES))
    if align <= max(want, 1024):
        tb = max(align, (want // align) * align)
    else:
        tb = want
    total_rows = _round_up(n_rows, tb)
    grid_steps = total_rows // tb
    pad = total_rows * _LANES - n_elem
    base_coef = (tb * _LANES) % num_params  # 0 on the aligned fast path

    # Lane-dense repack: flatten (free for contiguous input), zero-pad the
    # tail (zero diff -> zero contribution), view as (total_rows, 128).
    def repack(x):
        flat = x.reshape(-1)
        if pad:
            flat = jnp.pad(flat, (0, pad))
        return flat.reshape(total_rows, _LANES)

    kernel = functools.partial(_loss_kernel, num_params=num_params,
                               w_intr=w_intr, w_dist=w_dist,
                               base_coef=base_coef)

    out = pl.pallas_call(
        kernel,
        out_shape=jax.ShapeDtypeStruct((1,), jnp.float32),
        grid=(grid_steps,),
        in_specs=[pl.BlockSpec((tb, _LANES), lambda i: (i, 0)),
                  pl.BlockSpec((tb, _LANES), lambda i: (i, 0))],
        out_specs=pl.BlockSpec(memory_space=pltpu.MemorySpace.SMEM),
        compiler_params=pltpu.CompilerParams(
            dimension_semantics=("arbitrary",)),
    )(repack(pred), repack(target))
    return out[0]


def _reference_loss(pred, target, lambda_intrinsics=1.0, lambda_distortion=1.0):
    pred = pred.astype(jnp.float32)
    target = target.astype(jnp.float32)
    intr = jnp.mean((pred[:, :4] - target[:, :4]) ** 2)
    dist = jnp.mean((pred[:, 4:] - target[:, 4:]) ** 2)
    return lambda_intrinsics * intr + lambda_distortion * dist


if __name__ == "__main__":
    key = jax.random.PRNGKey(0)
    k1, k2, k3, k4, k5, k6 = jax.random.split(key, 6)

    # 1) Small demo: 4 intrinsics (fx, fy, cx, cy) + 5 distortion coeffs.
    batch, num_params = 8, 9
    pred = jax.random.normal(k1, (batch, num_params), dtype=jnp.float32)
    target = jax.random.normal(k2, (batch, num_params), dtype=jnp.float32)
    loss = jax.block_until_ready(
        camera_calibration_loss(pred, target,
                                lambda_intrinsics=1.0, lambda_distortion=1.0))
    ref = jax.block_until_ready(_reference_loss(pred, target))
    assert jnp.allclose(loss, ref, rtol=1e-5, atol=1e-6), (loss, ref)

    # 2) Multi-block, aligned path (grid > 1, non-trivial lambdas, padded tail).
    batch2, num_params2 = 4096, 9
    pred2 = jax.random.normal(k3, (batch2, num_params2), dtype=jnp.float32)
    target2 = jax.random.normal(k4, (batch2, num_params2), dtype=jnp.float32)
    loss2 = jax.block_until_ready(
        camera_calibration_loss(pred2, target2,
                                lambda_intrinsics=0.7, lambda_distortion=1.3,
                                block_rows=80))
    ref2 = jax.block_until_ready(_reference_loss(pred2, target2, 0.7, 1.3))
    assert jnp.allclose(loss2, ref2, rtol=1e-4, atol=1e-5), (loss2, ref2)

    # 3) Non-aligned fallback path (base_coef != 0, grid > 1).
    batch3, num_params3 = 96, 131
    pred3 = jax.random.normal(k5, (batch3, num_params3), dtype=jnp.float32)
    target3 = jax.random.normal(k6, (batch3, num_params3), dtype=jnp.float32)
    loss3 = jax.block_until_ready(
        camera_calibration_loss(pred3, target3,
                                lambda_intrinsics=0.5, lambda_distortion=2.0,
                                block_rows=48))
    ref3 = jax.block_until_ready(_reference_loss(pred3, target3, 0.5, 2.0))
    assert jnp.allclose(loss3, ref3, rtol=1e-4, atol=1e-5), (loss3, ref3)

    print("KERNEL_OK")
</pallas_src>

<mosaic_0001>
module attributes {stable_mosaic.version = 11 : i64} {
  func.func @_loss_kernel(%arg0: i32, %arg1: memref<72x128xf32, #tpu.memory_space<vmem>>, %arg2: memref<72x128xf32, #tpu.memory_space<vmem>>, %arg3: memref<1xf32, #tpu.memory_space<smem>>) attributes {dimension_semantics = [#tpu.dimension_semantics<arbitrary>], iteration_bounds = array<i64: 1>, scalar_prefetch = 0 : i64, scratch_operands = 0 : i64, tpu.core_type = #tpu.core_type<tc>, window_params = [{transform_indices = @transform_0, window_bounds = array<i64: 72, 128>}, {transform_indices = @transform_1, window_bounds = array<i64: 72, 128>}, {transform_indices = @transform_2, window_bounds = array<i64: 1>}]} {
    %c0_i32 = arith.constant 0 : i32
    %0 = arith.cmpi eq, %arg0, %c0_i32 : i32
    %1 = arith.extui %0 : i1 to i32
    %c0_i32_0 = arith.constant 0 : i32
    %2 = arith.cmpi ne, %1, %c0_i32_0 : i32
    scf.if %2 {
      %cst_12 = arith.constant 0.000000e+00 : f32
      %c0_13 = arith.constant 0 : index
      %41 = memref.load %arg3[%c0_13] : memref<1xf32, #tpu.memory_space<smem>>
      memref.store %cst_12, %arg3[%c0_13] : memref<1xf32, #tpu.memory_space<smem>>
    } else {
    }
    %c0 = arith.constant 0 : index
    %c0_1 = arith.constant 0 : index
    %3 = vector.load %arg1[%c0, %c0_1] : memref<72x128xf32, #tpu.memory_space<vmem>>, vector<72x128xf32>
    %c0_2 = arith.constant 0 : index
    %c0_3 = arith.constant 0 : index
    %4 = vector.load %arg2[%c0_2, %c0_3] : memref<72x128xf32, #tpu.memory_space<vmem>>, vector<72x128xf32>
    %5 = arith.subf %3, %4 : vector<72x128xf32>
    %6 = arith.mulf %5, %5 : vector<72x128xf32>
    %7 = tpu.iota {dimensions = array<i32: 0>} : vector<72x128xi32>
    %8 = tpu.iota {dimensions = array<i32: 1>} : vector<72x128xi32>
    %c128_i32 = arith.constant 128 : i32
    %9 = vector.broadcast %c128_i32 : i32 to vector<72x128xi32>
    %10 = arith.muli %7, %9 : vector<72x128xi32>
    %11 = arith.addi %10, %8 : vector<72x128xi32>
    %c9_i32 = arith.constant 9 : i32
    %c0_i32_4 = arith.constant 0 : i32
    %12 = arith.cmpi eq, %c9_i32, %c0_i32_4 : i32
    %c1_i32 = arith.constant 1 : i32
    %13 = arith.select %12, %c1_i32, %c9_i32 : i32
    %14 = vector.broadcast %13 : i32 to vector<72x128xi32>
    %15 = arith.remsi %11, %14 : vector<72x128xi32>
    %c0_i32_5 = arith.constant 0 : i32
    %16 = vector.broadcast %c0_i32_5 : i32 to vector<72x128xi32>
    %17 = arith.cmpi ne, %15, %16 : vector<72x128xi32>
    %c0_i32_6 = arith.constant 0 : i32
    %18 = vector.broadcast %c0_i32_6 : i32 to vector<72x128xi32>
    %19 = arith.cmpi slt, %15, %18 : vector<72x128xi32>
    %c0_i32_7 = arith.constant 0 : i32
    %20 = arith.cmpi slt, %13, %c0_i32_7 : i32
    %21 = vector.broadcast %20 : i1 to vector<72x128xi1>
    %22 = vector.broadcast %21 : vector<72x128xi1> to vector<72x128xi1>
    %23 = arith.xori %19, %22 : vector<72x128xi1>
    %24 = arith.andi %23, %17 : vector<72x128xi1>
    %25 = vector.broadcast %13 : i32 to vector<72x128xi32>
    %26 = arith.addi %15, %25 : vector<72x128xi32>
    %27 = arith.select %24, %26, %15 : vector<72x128xi1>, vector<72x128xi32>
    %c4_i32 = arith.constant 4 : i32
    %28 = vector.broadcast %c4_i32 : i32 to vector<72x128xi32>
    %29 = arith.cmpi slt, %27, %28 : vector<72x128xi32>
    %cst = arith.constant 3.125000e-02 : f32
    %cst_8 = arith.constant 2.500000e-02 : f32
    %30 = vector.broadcast %cst : f32 to vector<72x128xf32>
    %31 = vector.broadcast %cst_8 : f32 to vector<72x128xf32>
    %32 = arith.select %29, %30, %31 : vector<72x128xi1>, vector<72x128xf32>
    %c0_9 = arith.constant 0 : index
    %33 = memref.load %arg3[%c0_9] : memref<1xf32, #tpu.memory_space<smem>>
    %34 = arith.mulf %6, %32 : vector<72x128xf32>
    %35 = vector.shape_cast %34 : vector<72x128xf32> to vector<1x72x128xf32>
    %cst_10 = arith.constant dense<0.000000e+00> : vector<1xf32>
    %36 = vector.multi_reduction <add>, %35, %cst_10 [1, 2] : vector<1x72x128xf32> to vector<1xf32>
    %37 = vector.shape_cast %36 : vector<1xf32> to vector<1x1x1xf32>
    %38 = vector.extract %37[0, 0, 0] : f32 from vector<1x1x1xf32>
    %39 = arith.addf %33, %38 : f32
    %c0_11 = arith.constant 0 : index
    %40 = memref.load %arg3[%c0_11] : memref<1xf32, #tpu.memory_space<smem>>
    memref.store %39, %arg3[%c0_11] : memref<1xf32, #tpu.memory_space<smem>>
    return
  }
  func.func @transform_0(%arg0: i32) -> (i32, i32) {
    %c0_i32 = arith.constant 0 : i32
    %c0_i32_0 = arith.constant 0 : i32
    return %arg0, %c0_i32 : i32, i32
  }
  func.func @transform_1(%arg0: i32) -> (i32, i32) {
    %c0_i32 = arith.constant 0 : i32
    %c0_i32_0 = arith.constant 0 : i32
    return %arg0, %c0_i32 : i32, i32
  }
  func.func @transform_2(%arg0: i32) -> i32 {
    %c0_i32 = arith.constant 0 : i32
    %c0_i32_0 = arith.constant 0 : i32
    return %c0_i32 : i32
  }
}

</mosaic_0001>

<bundles_post_ra>
// kernel: tpu_custom_call.1
= control target key start
LH: loop header
LB: loop body
LE: loop exit
PB: predicated region body
PF: predicated region fallthrough
CT: control target
= control target key end

     0   :  { %7 = vsyncpa [#allocation3], 0  ;;  %s712_s0 = inlined_call_operand.hbm [shape: f32[72,128], index: 0, kind: input, shape index: {}]   ;;  %s713_s1 = inlined_call_operand.hbm [shape: f32[72,128], index: 1, kind: input, shape index: {}]   ;;  %s714_s2 = inlined_call_operand.hbm [shape: f32[1], index: 2, kind: output, shape index: {}]  }
   0x1   :  { %8 = vsyncpa [#allocation6], 0 }
   0x2   :  { %9 = vsyncpa [#allocation4], 0  ;;  %s415_s9 = smov [#allocation2]   ;;  %s355_s13 = scalar_lea.hbm %s712_s0, 1152 }
   0x3   :  { %s15_s10 = sshll.u32 %s415_s9, 4  ;;  %p356_p0 = scmp.ne.s32.totalorder %s712_s0, %s355_s13  ;;  %s16_s10 = int_to_ptr.vmem [resolvable:$true] %s15_s10 }
   0x4   :  { %p359_p1 = scmp.lt.u32.totalorder %s355_s13, %s712_s0 }
   0x6   :  { %p361_p2 = pnand %p359_p1, %p356_p0 }
   0x8   :  { %364 = shalt.err (!%p361_p2)
}
   0x9   :  { %s365_s18 = scalar_lea.vmem %s16_s10, 1152  ;;  %p370_p4 = scmp.lt.s32.totalorder %s16_s10, %s16_s10 }
   0xa   :  { %p366_p3 = scmp.ne.s32.totalorder %s16_s10, %s365_s18  ;;  %p371_p5 = scmp.lt.s32.totalorder %s365_s18, %s365_s18 }
   0xc   :  { %p372_p6 = por %p371_p5, %p370_p4 }
   0xe   :  { %p373_p7 = pnand %p372_p6, %p366_p3 }
  0x10   :  { %376 = shalt.err (!%p373_p7)
}
  0x11   :  { %s416_s19 = smov 128   ;;  %s417_s20 = smov 8  }
  0x12   :  { %21 = dma.hbm_to_vmem [thread:$0]  %s712_s0, 1152, %s16_s10, [#allocation3], %s416_s19, %s416_s19, %s417_s20  }
  0x13   :  { %s418_s23 = smov [#allocation5]   ;;  %s377_s27 = scalar_lea.hbm %s713_s1, 1152 }
  0x14   :  { %s27_s24 = sshll.u32 %s418_s23, 4  ;;  %p378_p8 = scmp.ne.s32.totalorder %s713_s1, %s377_s27  ;;  %s28_s24 = int_to_ptr.vmem [resolvable:$true] %s27_s24 }
  0x15   :  { %p381_p9 = scmp.lt.u32.totalorder %s377_s27, %s713_s1 }
  0x17   :  { %p383_p10 = pnand %p381_p9, %p378_p8 }
  0x19   :  { %386 = shalt.err (!%p383_p10)
}
  0x1a   :  { %s387_s4 = scalar_lea.vmem %s28_s24, 1152  ;;  %p392_p12 = scmp.lt.s32.totalorder %s28_s24, %s28_s24 }
  0x1b   :  { %p388_p11 = scmp.ne.s32.totalorder %s28_s24, %s387_s4  ;;  %p393_p13 = scmp.lt.s32.totalorder %s387_s4, %s387_s4 }
  0x1d   :  { %p394_p0 = por %p393_p13, %p392_p12 }
  0x1f   :  { %p395_p1 = pnand %p394_p0, %p388_p11 }
  0x21   :  { %398 = shalt.err (!%p395_p1)
}
  0x22   :  { %33 = dma.hbm_to_vmem [thread:$0]  %s713_s1, 1152, %s28_s24, [#allocation6], %s416_s19, %s416_s19, %s417_s20  }
  0x23   :  { %409 = dma.done.wait [#allocation3], 1152  }
  0x24   :  { %410 = vsyncadd [#allocation3], 4294966144 }
  0x25   :  { %411 = dma.done.wait [#allocation6], 1152  }
  0x26   :  { %412 = vsyncadd [#allocation6], 4294966144  ;;  %v82_v0 = vlaneseq  ;;  %v46_v19 = vld [vmem:[#allocation2] sm:$0xff]  ;;  %v47_v22 = vld [vmem:[#allocation2 + $0x8] sm:$0xff]  ;;  %s399_s8 = scalar_lea.hbm %s714_s2, 16 }
  0x27   :  { %v55_v23 = vld [vmem:[#allocation5] sm:$0xff]  ;;  %v56_v24 = vld [vmem:[#allocation5 + $0x8] sm:$0xff]  ;;  %v57_v27 = vld [vmem:[#allocation5 + $0x10] sm:$0xff]  ;;  %p400_p2 = scmp.ne.s32.totalorder %s714_s2, %s399_s8  ;;  %p403_p3 = scmp.lt.u32.totalorder %s399_s8, %s714_s2 }
  0x28   :  { %v83_v1 = vshrl.u32 %v82_v0, 7  ;;  %v93_v7 = vand.u32 127, %v82_v0  ;;  %v48_v26 = vld [vmem:[#allocation2 + $0x10] sm:$0xff]  ;;  %v64_v34 = vsub.f32 %v46_v19, %v55_v23  ;;  %v65_v35 = vsub.f32 %v47_v22, %v56_v24  ;;  %v49_v38 = vld [vmem:[#allocation2 + $0x18] sm:$0xff]  ;;  %v50_v43 = vld [vmem:[#allocation2 + $0x20] sm:$0xff] }
  0x29   :  { %v476_v39 = vsub.f32 %v48_v26, %v57_v27  ;;  %v58_v44 = vld [vmem:[#allocation5 + $0x18] sm:$0xff]  ;;  %v59_v45 = vld [vmem:[#allocation5 + $0x20] sm:$0xff]  ;;  %p405_p4 = pnand %p403_p3, %p400_p2 }
  0x2a   :  { %v84_v2 = vadd.s32 8, %v83_v1  ;;  %v85_v3 = vadd.s32 16, %v83_v1  ;;  %v86_v4 = vadd.s32 24, %v83_v1  ;;  %v87_v5 = vadd.s32 32, %v83_v1 }
  0x2b   :  { %v88_v6 = vadd.s32 40, %v83_v1  ;;  %v94_v8 = vmul.u32 128, %v83_v1  ;;  %v89_v13 = vadd.s32 48, %v83_v1  ;;  %v90_v15 = vadd.s32 56, %v83_v1 }
  0x2c   :  { %v95_v9 = vmul.u32 128, %v84_v2  ;;  %v96_v10 = vmul.u32 128, %v85_v3  ;;  %v91_v16 = vadd.s32 64, %v83_v1  ;;  %v499_v58 = vsub.f32 %v49_v38, %v58_v44 }
  0x2d   :  { %v97_v11 = vmul.u32 128, %v86_v4  ;;  %v98_v12 = vmul.u32 128, %v87_v5  ;;  %v460_v17 = vadd.s32 %v94_v8, %v93_v7  ;;  %v501_v59 = vsub.f32 %v50_v43, %v59_v45 }
  0x2e   :  { %v99_v14 = vmul.u32 128, %v88_v6  ;;  %v462_v18 = vadd.s32 %v95_v9, %v93_v7  ;;  %v464_v20 = vadd.s32 %v96_v10, %v93_v7  ;;  %v100_v28 = vmul.u32 128, %v89_v13 }
  0x2f   :  { %v466_v21 = vadd.s32 %v97_v11, %v93_v7  ;;  %v468_v25 = vadd.s32 %v98_v12, %v93_v7  ;;  %v101_v30 = vmul.u32 128, %v90_v15  ;;  %v102_v31 = vmul.u32 128, %v91_v16 }
  0x30   :  { %v470_v29 = vadd.s32 %v99_v14, %v93_v7  ;;  %v113_v32 = vsub.s32 0, %v460_v17  ;;  %v124_v33 = vsub.s32 0, %v462_v18  ;;  %v135_v36 = vsub.s32 0, %v464_v20 }
  0x31   :  { %v146_v37 = vsub.s32 0, %v466_v21  ;;  %v157_v42 = vsub.s32 0, %v468_v25  ;;  %v481_v46 = vadd.s32 %v100_v28, %v93_v7  ;;  %vm112_vm0 = vcmp.lt.s32.totalorder %v460_v17, 0 }
  0x32   :  { %v319_v40 = vmin.u32 %v113_v32, %v460_v17  ;;  %v320_v41 = vmin.u32 %v124_v33, %v462_v18  ;;  %v321_v47 = vmin.u32 %v135_v36, %v464_v20  ;;  %v168_v49 = vsub.s32 0, %v470_v29 }
  0x33   :  { %v322_v48 = vmin.u32 %v146_v37, %v466_v21  ;;  %v323_v60 = vmin.u32 %v157_v42, %v468_v25  ;;  %v505_v62 = vmul.f32 %v64_v34, %v64_v34  ;;  %v507_v63 = vmul.f32 %v65_v35, %v65_v35 }
  0x34   :  { %v486_v50 = vmul.u32.u64.low 3817748708, %v319_v40  ;;  %v487_v51 = vmul.u32.u64.high 3817748708, %v319_v40, %v486_v50  ;;  %v489_v52 = vmul.u32.u64.low 3817748708, %v320_v41  ;;  %v490_v53 = vmul.u32.u64.high 3817748708, %v320_v41, %v489_v52 }
  0x35   :  { %v493_v54 = vmul.u32.u64.low 3817748708, %v321_v47  ;;  %v494_v55 = vmul.u32.u64.high 3817748708, %v321_v47, %v493_v54  ;;  %v496_v56 = vmul.u32.u64.low 3817748708, %v322_v48  ;;  %v497_v57 = vmul.u32.u64.high 3817748708, %v322_v48, %v496_v56 }
  0x36   :  { %v324_v61 = vmin.u32 %v168_v49, %v470_v29  ;;  %v509_v0 = vadd.s32 %v101_v30, %v93_v7  ;;  %v511_v1 = vadd.s32 %v102_v31, %v93_v7  ;;  %v118_v2 = vshrl.u32 %v487_v51, 3 }
  0x37   :  { %v129_v3 = vshrl.u32 %v490_v53, 3  ;;  %v515_v4 = vmul.u32.u64.low 3817748708, %v323_v60  ;;  %v516_v5 = vmul.u32.u64.high 3817748708, %v323_v60, %v515_v4  ;;  %v140_v6 = vshrl.u32 %v494_v55, 3 }
  0x38   :  { %v151_v8 = vshrl.u32 %v497_v57, 3  ;;  %v520_v9 = vmul.u32.u64.low 3817748708, %v324_v61  ;;  %v521_v10 = vmul.u32.u64.high 3817748708, %v324_v61, %v520_v9  ;;  %v119_v11 = vmul.u32 9, %v118_v2 }
  0x39   :  { %vm123_vm1 = vcmp.lt.s32.totalorder %v462_v18, 0  ;;  %v130_v12 = vmul.u32 9, %v129_v3  ;;  %v179_v7 = vsub.s32 0, %v481_v46  ;;  %vm134_vm2 = vcmp.lt.s32.totalorder %v464_v20, 0 }
  0x3a   :  { %v141_v13 = vmul.u32 9, %v140_v6  ;;  %v152_v14 = vmul.u32 9, %v151_v8  ;;  %v190_v15 = vsub.s32 0, %v509_v0  ;;  %v120_v16 = vsub.s32 %v319_v40, %v119_v11 }
  0x3b   :  { %v131_v19 = vsub.s32 %v320_v41, %v130_v12  ;;  %v162_v22 = vshrl.u32 %v516_v5, 3  ;;  %v201_v23 = vsub.s32 0, %v511_v1  ;;  %vm145_vm3 = vcmp.lt.s32.totalorder %v466_v21, 0 }
  0x3c   :  { %v142_v24 = vsub.s32 %v321_v47, %v141_v13  ;;  %v153_v26 = vsub.s32 %v322_v48, %v152_v14  ;;  %v173_v27 = vshrl.u32 %v521_v10, 3  ;;  %v121_v28 = vsub.s32 0, %v120_v16 }
  0x3d   :  { %v132_v30 = vsub.s32 0, %v131_v19  ;;  %v163_v31 = vmul.u32 9, %v162_v22  ;;  %v325_v32 = vmin.u32 %v179_v7, %v481_v46  ;;  %v326_v36 = vmin.u32 %v190_v15, %v509_v0 }
  0x3e   :  { %v143_v33 = vsub.s32 0, %v142_v24  ;;  %v154_v34 = vsub.s32 0, %v153_v26  ;;  %v174_v35 = vmul.u32 9, %v173_v27  ;;  %v535_v37 = vsel %vm112_vm0, %v121_v28, %v120_v16 }
  0x3f   :  { %vm156_vm4 = vcmp.lt.s32.totalorder %v468_v25, 0  ;;  %v164_v38 = vsub.s32 %v323_v60, %v163_v31  ;;  %v327_v40 = vmin.u32 %v201_v23, %v511_v1  ;;  %v133_v41 = vsel %vm123_vm1, %v132_v30, %v131_v19  ;;  %v51_v31 = vld [vmem:[#allocation2 + $0x28] sm:$0xff] }
  0x40   :  { %v543_v42 = vsel %vm134_vm2, %v143_v33, %v142_v24  ;;  %vm167_vm5 = vcmp.lt.s32.totalorder %v470_v29, 0  ;;  %v175_v43 = vsub.s32 %v324_v61, %v174_v35  ;;  %v548_v17 = vsel %vm145_vm3, %v154_v34, %v153_v26  ;;  %v52_v35 = vld [vmem:[#allocation2 + $0x30] sm:$0xff] }
  0x41   :  { %v165_v44 = vsub.s32 0, %v164_v38  ;;  %v550_v45 = vmul.u32.u64.low 3817748708, %v325_v32  ;;  %v551_v25 = vmul.u32.u64.high 3817748708, %v325_v32, %v550_v45  ;;  %vm211_vm6 = vcmp.ne.s32.totalorder %v535_v37, 0 }
  0x42   :  { %v176_v47 = vsub.s32 0, %v175_v43  ;;  %v553_v48 = vmul.u32.u64.low 3817748708, %v326_v36  ;;  %v554_v49 = vmul.u32.u64.high 3817748708, %v326_v36, %v553_v48  ;;  %vm212_vm7 = vcmp.ne.s32.totalorder %v133_v41, 0 }
  0x43   :  { %v557_v18 = vsel %vm156_vm4, %v165_v44, %v164_v38  ;;  %v559_v20 = vmul.u32.u64.low 3817748708, %v327_v40  ;;  %v560_v50 = vmul.u32.u64.high 3817748708, %v327_v40, %v559_v20  ;;  %vm213_vm8 = vcmp.ne.s32.totalorder %v543_v42, 0 }
  0x44   :  { %vm214_vm9 = vcmp.ne.s32.totalorder %v548_v17, 0  ;;  %vm220_vm10 = vcmp.lt.s32.totalorder %v535_v37, 0  ;;  %vm221_vm11 = vcmp.lt.s32.totalorder %v133_v41, 0  ;;  %v567_v21 = vsel %vm167_vm5, %v176_v47, %v175_v43  ;;  %v53_v43 = vld [vmem:[#allocation2 + $0x38] sm:$0xff] }
  0x45   :  { %v184_v51 = vshrl.u32 %v551_v25, 3  ;;  %vm222_vm12 = vcmp.lt.s32.totalorder %v543_v42, 0  ;;  %vm223_vm13 = vcmp.lt.s32.totalorder %v548_v17, 0  ;;  %vm574_vm14 = vmand %vm220_vm10, %vm211_vm6  ;;  %v195_v53 = vshrl.u32 %v554_v49, 3 }
  0x46   :  { %vm215_vm15 = vcmp.ne.s32.totalorder %v557_v18, 0  ;;  %vm224_vm0 = vcmp.lt.s32.totalorder %v557_v18, 0  ;;  %vm582_vm1 = vmand %vm221_vm11, %vm212_vm7  ;;  %v238_v54 = vadd.s32 9, %v535_v37  ;;  %v206_v56 = vshrl.u32 %v560_v50, 3  ;;  %v54_v50 = vld [vmem:[#allocation2 + $0x40] sm:$0xff] }
  0x47   :  { %v185_v55 = vmul.u32 9, %v184_v51  ;;  %vm590_vm2 = vmand %vm222_vm12, %vm213_vm8  ;;  %v239_v60 = vadd.s32 9, %v133_v41  ;;  %v240_v61 = vadd.s32 9, %v543_v42  ;;  %vm178_vm3 = vcmp.lt.s32.totalorder %v481_v46, 0 }
  0x48   :  { %v196_v2 = vmul.u32 9, %v195_v53  ;;  %vm598_vm4 = vmand %vm223_vm13, %vm214_vm9  ;;  %v241_v4 = vadd.s32 9, %v548_v17  ;;  %v242_v5 = vadd.s32 9, %v557_v18  ;;  %vm189_vm5 = vcmp.lt.s32.totalorder %v509_v0, 0 }
  0x49   :  { %v186_v6 = vsub.s32 %v325_v32, %v185_v55  ;;  %v207_v8 = vmul.u32 9, %v206_v56  ;;  %vm216_vm6 = vcmp.ne.s32.totalorder %v567_v21, 0  ;;  %vm610_vm7 = vmand %vm224_vm0, %vm215_vm15  ;;  %vm225_vm8 = vcmp.lt.s32.totalorder %v567_v21, 0  ;;  %v60_v32 = vld [vmem:[#allocation5 + $0x28] sm:$0xff] }
  0x4a   :  { %v197_v10 = vsub.s32 %v326_v36, %v196_v2  ;;  %v247_v11 = vsel %vm574_vm14, %v238_v54, %v535_v37  ;;  %v248_v12 = vsel %vm582_vm1, %v239_v60, %v133_v41  ;;  %vm200_vm9 = vcmp.lt.s32.totalorder %v511_v1, 0  ;;  %vm635_vm10 = vmand %vm225_vm8, %vm216_vm6  ;;  %v61_v36 = vld [vmem:[#allocation5 + $0x30] sm:$0xff] }
  0x4b   :  { %v187_v7 = vsub.s32 0, %v186_v6  ;;  %v208_v13 = vsub.s32 %v327_v40, %v207_v8  ;;  %v249_v14 = vsel %vm590_vm2, %v240_v61, %v543_v42  ;;  %v243_v16 = vadd.s32 9, %v567_v21 }
  0x4c   :  { %v198_v15 = vsub.s32 0, %v197_v10  ;;  %v250_v19 = vsel %vm598_vm4, %v241_v4, %v548_v17  ;;  %v251_v22 = vsel %vm610_vm7, %v242_v5, %v557_v18  ;;  %vm639_vm11 = vcmp.lt.s32.totalorder %v247_v11, 4  ;;  %v62_v17 = vld [vmem:[#allocation5 + $0x38] sm:$0xff] }
  0x4d   :  { %v188_v23 = vsel %vm178_vm3, %v187_v7, %v186_v6  ;;  %v209_v24 = vsub.s32 0, %v208_v13  ;;  %vm643_vm12 = vcmp.lt.s32.totalorder %v248_v12, 4  ;;  %vm649_vm15 = vcmp.lt.s32.totalorder %v249_v14, 4 }
  0x4e   :  { %v199_v30 = vsel %vm189_vm5, %v198_v15, %v197_v10  ;;  %vm217_vm13 = vcmp.ne.s32.totalorder %v188_v23, 0  ;;  %vm226_vm14 = vcmp.lt.s32.totalorder %v188_v23, 0  ;;  %v244_v34 = vadd.s32 9, %v188_v23 }
  0x4f   :  { %v210_v33 = vsel %vm200_vm9, %v209_v24, %v208_v13  ;;  %vm218_vm0 = vcmp.ne.s32.totalorder %v199_v30, 0  ;;  %vm227_vm1 = vcmp.lt.s32.totalorder %v199_v30, 0  ;;  %v75_v0 = vmul.f32 %v476_v39, %v476_v39  ;;  %vm657_vm2 = vmand %vm226_vm14, %vm217_vm13 }
  0x50   :  { %v245_v38 = vadd.s32 9, %v199_v30  ;;  %v252_v40 = vsel %vm635_vm10, %v243_v16, %v567_v21  ;;  %vm664_vm3 = vcmp.lt.s32.totalorder %v250_v19, 4  ;;  %vm219_vm4 = vcmp.ne.s32.totalorder %v210_v33, 0  ;;  %vm676_vm6 = vmand %vm227_vm1, %vm218_vm0 }
  0x51   :  { %vm228_vm5 = vcmp.lt.s32.totalorder %v210_v33, 0  ;;  %v419_v41 = vmov 0.025   ;;  %v69_v44 = vsub.f32 %v51_v31, %v60_v32  ;;  %v76_v45 = vmul.f32 %v499_v58, %v499_v58  ;;  %v63_v58 = vld [vmem:[#allocation5 + $0x40] sm:$0xff] }
  0x52   :  { %v265_v42 = vsel %vm639_vm11, 0.03125, %v419_v41  ;;  %v266_v39 = vsel %vm643_vm12, 0.03125, %v419_v41  ;;  %vm260_vm7 = vcmp.lt.s32.totalorder %v251_v22, 4  ;;  %v267_v47 = vsel %vm649_vm15, 0.03125, %v419_v41  ;;  %vm690_vm8 = vmand %vm228_vm5, %vm219_vm4 }
  0x53   :  { %v70_v48 = vsub.f32 %v52_v35, %v61_v36  ;;  %v246_v49 = vadd.s32 9, %v210_v33  ;;  %v253_v18 = vsel %vm657_vm2, %v244_v34, %v188_v23  ;;  %v268_v20 = vsel %vm664_vm3, 0.03125, %v419_v41 }
  0x54   :  { %v77_v21 = vmul.f32 %v501_v59, %v501_v59  ;;  %vm261_vm9 = vcmp.lt.s32.totalorder %v252_v40, 4  ;;  %v275_v52 = vmul.f32 %v265_v42, %v505_v62  ;;  %v276_v53 = vmul.f32 %v266_v39, %v507_v63 }
  0x55   :  { %v71_v29 = vsub.f32 %v53_v43, %v62_v17  ;;  %v254_v54 = vsel %vm676_vm6, %v245_v38, %v199_v30  ;;  %v269_v55 = vsel %vm260_vm7, 0.03125, %v419_v41  ;;  %v277_v56 = vmul.f32 %v267_v47, %v75_v0 }
  0x56   :  { %v78_v57 = vmul.f32 %v69_v44, %v69_v44  ;;  %vm262_vm10 = vcmp.lt.s32.totalorder %v253_v18, 4  ;;  %v278_v59 = vmul.f32 %v268_v20, %v76_v45  ;;  %v284_v60 = vadd.f32 %v276_v53, %v275_v52 }
  0x57   :  { %v72_v61 = vsub.f32 %v54_v50, %v63_v58  ;;  %v255_v2 = vsel %vm690_vm8, %v246_v49, %v210_v33  ;;  %v270_v3 = vsel %vm261_vm9, 0.03125, %v419_v41  ;;  %v79_v4 = vmul.f32 %v70_v48, %v70_v48 }
  0x58   :  { %vm263_vm11 = vcmp.lt.s32.totalorder %v254_v54, 4  ;;  %v279_v62 = vmul.f32 %v269_v55, %v77_v21  ;;  %v285_v5 = vadd.f32 %v284_v60, %v277_v56  ;;  %v271_v63 = vsel %vm262_vm10, 0.03125, %v419_v41 }
  0x59   :  { %v80_v6 = vmul.f32 %v71_v29, %v71_v29  ;;  %vm264_vm12 = vcmp.lt.s32.totalorder %v255_v2, 4  ;;  %v280_v8 = vmul.f32 %v270_v3, %v78_v57  ;;  %v272_v10 = vsel %vm263_vm11, 0.03125, %v419_v41 }
  0x5a   :  { %v286_v9 = vadd.f32 %v285_v5, %v278_v59  ;;  %v81_v11 = vmul.f32 %v72_v61, %v72_v61  ;;  %v281_v12 = vmul.f32 %v271_v63, %v79_v4  ;;  %v273_v13 = vsel %vm264_vm12, 0.03125, %v419_v41 }
  0x5b   :  { %v282_v14 = vmul.f32 %v272_v10, %v80_v6 }
  0x5c   :  { %v287_v7 = vadd.f32 %v286_v9, %v279_v62  ;;  %v283_v16 = vmul.f32 %v273_v13, %v81_v11 }
  0x5e   :  { %v288_v15 = vadd.f32 %v287_v7, %v280_v8 }
  0x60   :  { %v289_v19 = vadd.f32 %v288_v15, %v281_v12 }
  0x62   :  { %v290_v22 = vadd.f32 %v289_v19, %v282_v14 }
  0x64   :  { %v291_v23 = vadd.f32 %v290_v22, %v283_v16 }
  0x66   :  { %292 = vadd.xlane.f32.xlu0 %v291_v23 }
  0xf3   :  { %v293_v24 = vpop.xlane.xlu0 %292 }
  0xf4   :  { %v294_v26 = vrot.slane %v293_v24, 4 }
  0xf6   :  { %v295_v27 = vadd.f32 %v294_v26, %v293_v24 }
  0xf8   :  { %v296_v28 = vrot.slane %v295_v27, 2 }
  0xfa   :  { %v297_v30 = vadd.f32 %v296_v28, %v295_v27 }
  0xfc   :  { %v298_v46 = vrot.slane %v297_v30, 1 }
  0xfe   :  { %v299_v31 = vadd.f32 %v298_v46, %v297_v30 }
 0x100   :  { %346 = vpush %v299_v31 }
 0x131   :  { %s347_s1 = spop %346 }
 0x132   :  { %303 = sst [smem:[#allocation7]] %s347_s1 }
 0x133   :  { %408 = shalt.err (!%p405_p4)
}
 0x134   :  { %s420_s13 = smov [#allocation7]  }
 0x135   :  { %311 = dma.smem_to_hbm %s420_s13, 16, %s714_s2, [#allocation4]  }
 0x136   :  { %413 = dma.done.wait [#allocation4], 16  }
 0x137   :  { %414 = vsyncadd [#allocation4], 4294967280 }
 0x138   :  { %315 = sfence }
 0x139   :  { %316 = vsyncpa [#allocation3], 1 }
 0x13a   :  { %317 = vsyncpa [#allocation6], 1 }
 0x13b   :  { %318 = vsyncpa [#allocation4], 1 }

</bundles_post_ra>
